<compile_context>
chip_gen: v6e
topology: v6e:2x2x1
jax: 0.10.0
libtpu: 0.0.40
codegen_flags: <defaults>
</compile_context>

<pallas_src>
import math

import jax
import jax.numpy as jnp
from jax.experimental import pallas as pl
from jax.experimental.pallas import tpu as pltpu

d_model = 32
d_k = d_v = 64
n_heads = 2
LN_EPS = 1e-5                       # PyTorch nn.LayerNorm default eps
MASK_FILL = -1e9                    # torch masked_fill_ value
_F32_MAX = float(jnp.finfo(jnp.float32).max)


# --------------------------------------------------------------------------------------
# Kernel
# --------------------------------------------------------------------------------------
def _attend_block(res, q_all, k_all, v_all, cap_ref, fc_ref, attn_ref, Bt, L):
    """Attention + output projection + residual + LayerNorm for one (Bt, L) block.

    res/q_all/k_all/v_all are [Bt*L, ...] (batch folded into sublanes).  All slices
    below are static: sublane offsets are multiples of 8, lane offsets multiples of 64.
    Returns the LayerNorm'd output, shape [Bt*L, d_model].
    """
    outs = []
    for b in range(Bt):                                  # static unroll over batch rows
        rows = slice(b * L, (b + 1) * L)
        cap_b = cap_ref[b]                               # [L, L]: +MAX kept, -1e9 masked
        out_b = res[rows, :]                             # residual (== input_Q rows)
        for h in range(n_heads):                         # static unroll over heads
            q = q_all[rows, h * d_k:(h + 1) * d_k]       # [L, d_k]
            k = k_all[rows, h * d_k:(h + 1) * d_k]       # [L, d_k]
            v = v_all[rows, h * d_v:(h + 1) * d_v]       # [L, d_v]
            # scores = Q K^T, contracting the last dims (no materialized transpose).
            # 1/sqrt(d_k) is already folded into W_Q (exact: 1/8 is a power of two).
            s = jax.lax.dot_general(q, k, (((1,), (1,)), ((), ())),
                                    preferred_element_type=jnp.float32)   # [L, L]
            # masked_fill(mask, -1e9)  ==  min(s, cap): one VPU op, no compare/select.
            s = jnp.minimum(s, cap_b)
            m = jnp.max(s, axis=-1, keepdims=True)
            e = jnp.exp(s - m)
            ssum = jnp.sum(e, axis=-1, keepdims=True)
            r = pl.reciprocal(ssum, approx=True)         # EUP slot (otherwise idle here)
            r = r * (2.0 - ssum * r)                     # one Newton step -> ~f32 exact
            p = e * r
            if attn_ref is not None:
                # TODO(synk): lane-dense [B, n_heads*L*L] attn relayout (single unmasked
                # vst) once L/H grow; at L=8 the relayout costs about what it saves.
                attn_ref[b, h] = p.astype(attn_ref.dtype)
            ctx = jnp.dot(p, v, preferred_element_type=jnp.float32)       # [L, d_v]
            # fused output projection as a sum over sublane-aligned fc slices (+residual)
            out_b = out_b + jnp.dot(ctx, fc_ref[h * d_v:(h + 1) * d_v, :],
                                    preferred_element_type=jnp.float32)
        outs.append(out_b)

    out = outs[0] if Bt == 1 else jnp.concatenate(outs, axis=0)           # [Bt*L, d_model]
    # LayerNorm over the whole block at once.  PyTorch module rebuilds nn.LayerNorm each
    # forward => gamma = 1, beta = 0, so no scale/shift inputs are needed.
    mean = jnp.mean(out, axis=-1, keepdims=True)
    var = jnp.mean((out - mean) ** 2, axis=-1, keepdims=True)
    return (out - mean) * jax.lax.rsqrt(var + jnp.float32(LN_EPS))


def _make_kernel(self_attn: bool, store_attn: bool):
    hk = n_heads * d_k

    def kernel(*refs):
        if self_attn:
            x_ref, cap_ref, wqkv_ref, fc_ref, *out_refs = refs
            xq_ref = xk_ref = xv_ref = x_ref
        else:
            xq_ref, xk_ref, xv_ref, cap_ref, wqkv_ref, fc_ref, *out_refs = refs
        out_ref = out_refs[0]
        attn_ref = out_refs[1] if store_attn else None

        Bt, L, dm = xq_ref.shape
        # Fold the batch rows of the block into sublanes (layout-preserving merge).
        xq = xq_ref[...].reshape(Bt * L, dm)

        if self_attn:
            # Single [Bt*L, 32] x [32, 384] matmul yields Q, K and V in one MXU pass set.
            qkv = jnp.dot(xq, wqkv_ref[...], preferred_element_type=jnp.float32)
            q_all = qkv[:, :hk]
            k_all = qkv[:, hk:2 * hk]
            v_all = qkv[:, 2 * hk:]
        else:
            xk = xk_ref[...].reshape(Bt * L, dm)
            xv = xv_ref[...].reshape(Bt * L, dm)
            q_all = jnp.dot(xq, wqkv_ref[:, :hk], preferred_element_type=jnp.float32)
            k_all = jnp.dot(xk, wqkv_ref[:, hk:2 * hk], preferred_element_type=jnp.float32)
            v_all = jnp.dot(xv, wqkv_ref[:, 2 * hk:], preferred_element_type=jnp.float32)

        normed = _attend_block(xq, q_all, k_all, v_all, cap_ref, fc_ref, attn_ref, Bt, L)
        out_ref[...] = normed.reshape(Bt, L, dm).astype(out_ref.dtype)

    return kernel


# --------------------------------------------------------------------------------------
# Wrapper
# --------------------------------------------------------------------------------------
def _tensorcores_per_chip() -> int:
    try:
        kind = jax.devices()[0].device_kind.lower()
    except Exception:
        return 1
    return 2 if ("v7" in kind or "7x" in kind) else 1


def _choose_grid_steps(B, L, dm):
    # v7x: 2 TensorCores/chip -> keep >= 2 "parallel" grid steps so both cores work.
    # v5e/v6e (single TC): the grid is a serial loop, so one fat step removes the
    # ~0.35us fixed per-step overhead that dominates at these sizes.
    steps = 2 if (_tensorcores_per_chip() >= 2 and B >= 2) else 1
    # Cap the per-step batch block so (double-buffered) blocks stay well under the
    # smallest scoped-VMEM budget (v7x: 32 MiB default / 64 MiB physical per TC).
    per_elem_bytes = 4 * (4 * L * dm + (1 + n_heads) * L * L)
    max_bt = max(1, (8 << 20) // (2 * per_elem_bytes))
    steps = max(steps, pl.cdiv(B, max_bt))
    while B % steps:                 # need an even split (no padding path at these sizes)
        steps += 1
    return min(steps, B)


def multi_head_attention(input_Q, input_K, input_V, attn_mask, wq, wk, wv, fc,
                         *, return_attn=True):
    """wq/wk/wv: [n_heads, d_model, d_k|d_v] (per-head slices of the torch Linear
    weight^T); fc: [n_heads, d_v, d_model]; attn_mask: [B, L, L], nonzero == masked."""
    B, L, dm = input_Q.shape
    H = n_heads
    self_attn = (input_K is input_Q) and (input_V is input_Q)

    # Fuse all projection weights into one lane-dense [32, 384] matrix.  The 1/sqrt(d_k)
    # scale is folded into the Q columns -- bit-exact, since 1/sqrt(64) = 0.125 = 2^-3.
    wq_all = (jnp.transpose(wq, (1, 0, 2)).reshape(dm, H * d_k)
              * jnp.float32(1.0 / math.sqrt(d_k)))
    wk_all = jnp.transpose(wk, (1, 0, 2)).reshape(dm, H * d_k)
    wv_all = jnp.transpose(wv, (1, 0, 2)).reshape(dm, H * d_v)
    wqkv_all = jnp.concatenate([wq_all, wk_all, wv_all], axis=1)     # [32, 3*H*d_k]
    fc_all = fc.reshape(H * d_v, dm)                                 # [H*d_v, 32]

    # Score cap replacing the in-kernel compare/select:
    #   min(scores, cap) == scores.masked_fill_(mask, -1e9)   (exactly, all cases).
    cap = jnp.where(attn_mask != 0, jnp.float32(MASK_FILL), jnp.float32(_F32_MAX))

    steps = _choose_grid_steps(B, L, dm)
    Bt = B // steps

    x_spec = pl.BlockSpec((Bt, L, dm), lambda b: (b, 0, 0))
    in_specs = ([x_spec] if self_attn else [x_spec, x_spec, x_spec]) + [
        pl.BlockSpec((Bt, L, L), lambda b: (b, 0, 0)),               # score cap (mask)
        pl.BlockSpec((dm, 3 * H * d_k), lambda b: (0, 0)),           # fused W_QKV
        pl.BlockSpec((H * d_v, dm), lambda b: (0, 0)),               # fused fc
    ]
    out_specs = [pl.BlockSpec((Bt, L, dm), lambda b: (b, 0, 0))]
    out_shapes = [jax.ShapeDtypeStruct((B, L, dm), jnp.float32)]
    if return_attn:
        out_specs.append(pl.BlockSpec((Bt, H, L, L), lambda b: (b, 0, 0, 0)))
        out_shapes.append(jax.ShapeDtypeStruct((B, H, L, L), jnp.float32))

    args = ([input_Q] if self_attn else [input_Q, input_K, input_V]) + [cap, wqkv_all, fc_all]

    outs = pl.pallas_call(
        _make_kernel(self_attn, return_attn),
        out_shape=tuple(out_shapes),
        grid_spec=pltpu.PrefetchScalarGridSpec(
            num_scalar_prefetch=0,
            grid=(steps,),
            in_specs=in_specs,
            out_specs=out_specs),
        compiler_params=pltpu.CompilerParams(
            dimension_semantics=("parallel",)),          # v7x: batch steps across both TCs
    )(*args)

    if return_attn:
        out, attn = outs
        return out, attn
    return outs[0]


# --------------------------------------------------------------------------------------
# Pure-JAX reference (mirrors the PyTorch forward; fresh LayerNorm => gamma=1, beta=0)
# --------------------------------------------------------------------------------------
def reference_forward(input_Q, input_K, input_V, attn_mask, wq, wk, wv, fc):
    Q = jnp.einsum('bld,hdk->bhlk', input_Q, wq)
    K = jnp.einsum('bld,hdk->bhlk', input_K, wk)
    V = jnp.einsum('bld,hdk->bhlk', input_V, wv)
    scores = jnp.einsum('bhqk,bhmk->bhqm', Q, K) / math.sqrt(d_k)
    scores = jnp.where(attn_mask[:, None] != 0, MASK_FILL, scores)
    attn = jax.nn.softmax(scores, axis=-1)
    ctx = jnp.einsum('bhqm,bhmd->bhqd', attn, V)
    out = jnp.einsum('bhqd,hdm->bqm', ctx, fc) + input_Q
    mean = jnp.mean(out, axis=-1, keepdims=True)
    var = jnp.mean((out - mean) ** 2, axis=-1, keepdims=True)
    return (out - mean) / jnp.sqrt(var + LN_EPS), attn


if __name__ == "__main__":
    key = jax.random.PRNGKey(0)
    kq, kk, kv, km, kwq, kwk, kwv, kfc = jax.random.split(key, 8)

    B, L = 2, 8
    input_Q = jax.random.normal(kq, (B, L, d_model), dtype=jnp.float32)
    input_K = jax.random.normal(kk, (B, L, d_model), dtype=jnp.float32)
    input_V = jax.random.normal(kv, (B, L, d_model), dtype=jnp.float32)
    # Boolean-style mask as float {0,1}; 1.0 -> masked.
    attn_mask = (jax.random.uniform(km, (B, L, L)) < 0.2).astype(jnp.float32)

    # Per-head slices of Linear weight^T (Linear(d_model, d_k*n_heads, bias=False), etc.).
    wq = jax.random.normal(kwq, (n_heads, d_model, d_k), dtype=jnp.float32) * 0.1
    wk = jax.random.normal(kwk, (n_heads, d_model, d_k), dtype=jnp.float32) * 0.1
    wv = jax.random.normal(kwv, (n_heads, d_model, d_v), dtype=jnp.float32) * 0.1
    fc = jax.random.normal(kfc, (n_heads, d_v, d_model), dtype=jnp.float32) * 0.1

    # General (cross-attention) path.
    out, attn = multi_head_attention(input_Q, input_K, input_V, attn_mask,
                                     wq, wk, wv, fc)
    jax.block_until_ready((out, attn))
    ref_out, ref_attn = reference_forward(input_Q, input_K, input_V, attn_mask,
                                          wq, wk, wv, fc)
    assert jnp.allclose(out, ref_out, atol=1e-4, rtol=1e-4), "output mismatch"
    assert jnp.allclose(attn, ref_attn, atol=1e-5, rtol=1e-5), "attn mismatch"

    # Self-attention fast path (Q is K is V -> single fused x @ W_QKV matmul).
    out_sa, attn_sa = multi_head_attention(input_Q, input_Q, input_Q, attn_mask,
                                           wq, wk, wv, fc)
    jax.block_until_ready((out_sa, attn_sa))
    ref_out_sa, ref_attn_sa = reference_forward(input_Q, input_Q, input_Q, attn_mask,
                                                wq, wk, wv, fc)
    assert jnp.allclose(out_sa, ref_out_sa, atol=1e-4, rtol=1e-4), "self-attn output mismatch"
    assert jnp.allclose(attn_sa, ref_attn_sa, atol=1e-5, rtol=1e-5), "self-attn attn mismatch"

    print("KERNEL_OK")
</pallas_src>

<mosaic_0001>
module attributes {stable_mosaic.version = 11 : i64} {
  func.func @kernel(%arg0: i32, %arg1: memref<2x8x32xf32, #tpu.memory_space<vmem>>, %arg2: memref<2x8x32xf32, #tpu.memory_space<vmem>>, %arg3: memref<2x8x32xf32, #tpu.memory_space<vmem>>, %arg4: memref<2x8x8xf32, #tpu.memory_space<vmem>>, %arg5: memref<32x384xf32, #tpu.memory_space<vmem>>, %arg6: memref<128x32xf32, #tpu.memory_space<vmem>>, %arg7: memref<2x8x32xf32, #tpu.memory_space<vmem>>, %arg8: memref<2x2x8x8xf32, #tpu.memory_space<vmem>>) attributes {dimension_semantics = [#tpu.dimension_semantics<parallel>], iteration_bounds = array<i64: 1>, scalar_prefetch = 0 : i64, scratch_operands = 0 : i64, tpu.core_type = #tpu.core_type<tc>, window_params = [{transform_indices = @transform_0, window_bounds = array<i64: 2, 8, 32>}, {transform_indices = @transform_1, window_bounds = array<i64: 2, 8, 32>}, {transform_indices = @transform_2, window_bounds = array<i64: 2, 8, 32>}, {transform_indices = @transform_3, window_bounds = array<i64: 2, 8, 8>}, {pipeline_mode = #tpu.pipeline_mode<synchronous>, transform_indices = @transform_4, window_bounds = array<i64: 32, 384>}, {pipeline_mode = #tpu.pipeline_mode<synchronous>, transform_indices = @transform_5, window_bounds = array<i64: 128, 32>}, {transform_indices = @transform_6, window_bounds = array<i64: 2, 8, 32>}, {transform_indices = @transform_7, window_bounds = array<i64: 2, 2, 8, 8>}]} {
    %c0 = arith.constant 0 : index
    %c0_0 = arith.constant 0 : index
    %c0_1 = arith.constant 0 : index
    %0 = vector.load %arg1[%c0, %c0_0, %c0_1] : memref<2x8x32xf32, #tpu.memory_space<vmem>>, vector<2x8x32xf32>
    %1 = vector.shape_cast %0 : vector<2x8x32xf32> to vector<16x32xf32>
    %c0_2 = arith.constant 0 : index
    %c0_3 = arith.constant 0 : index
    %c0_4 = arith.constant 0 : index
    %2 = vector.load %arg2[%c0_2, %c0_3, %c0_4] : memref<2x8x32xf32, #tpu.memory_space<vmem>>, vector<2x8x32xf32>
    %3 = vector.shape_cast %2 : vector<2x8x32xf32> to vector<16x32xf32>
    %c0_5 = arith.constant 0 : index
    %c0_6 = arith.constant 0 : index
    %c0_7 = arith.constant 0 : index
    %4 = vector.load %arg3[%c0_5, %c0_6, %c0_7] : memref<2x8x32xf32, #tpu.memory_space<vmem>>, vector<2x8x32xf32>
    %5 = vector.shape_cast %4 : vector<2x8x32xf32> to vector<16x32xf32>
    %c0_8 = arith.constant 0 : index
    %c0_9 = arith.constant 0 : index
    %6 = vector.load %arg5[%c0_8, %c0_9] : memref<32x384xf32, #tpu.memory_space<vmem>>, vector<32x128xf32>
    %cst = arith.constant dense<0.000000e+00> : vector<16x128xf32>
    %7 = tpu.matmul %1, %6, %cst {dimension_numbers = #tpu.dot_dimension_numbers<[1], [0], [0], [1], [0, 0, 1, 1], [], []>} : vector<16x32xf32>, vector<32x128xf32>, vector<16x128xf32> -> vector<16x128xf32>
    %c0_10 = arith.constant 0 : index
    %c128 = arith.constant 128 : index
    %8 = vector.load %arg5[%c0_10, %c128] : memref<32x384xf32, #tpu.memory_space<vmem>>, vector<32x128xf32>
    %cst_11 = arith.constant dense<0.000000e+00> : vector<16x128xf32>
    %9 = tpu.matmul %3, %8, %cst_11 {dimension_numbers = #tpu.dot_dimension_numbers<[1], [0], [0], [1], [0, 0, 1, 1], [], []>} : vector<16x32xf32>, vector<32x128xf32>, vector<16x128xf32> -> vector<16x128xf32>
    %c0_12 = arith.constant 0 : index
    %c256 = arith.constant 256 : index
    %10 = vector.load %arg5[%c0_12, %c256] : memref<32x384xf32, #tpu.memory_space<vmem>>, vector<32x128xf32>
    %cst_13 = arith.constant dense<0.000000e+00> : vector<16x128xf32>
    %11 = tpu.matmul %5, %10, %cst_13 {dimension_numbers = #tpu.dot_dimension_numbers<[1], [0], [0], [1], [0, 0, 1, 1], [], []>} : vector<16x32xf32>, vector<32x128xf32>, vector<16x128xf32> -> vector<16x128xf32>
    %c0_14 = arith.constant 0 : index
    %c0_15 = arith.constant 0 : index
    %c0_16 = arith.constant 0 : index
    %12 = vector.load %arg4[%c0_14, %c0_15, %c0_16] : memref<2x8x8xf32, #tpu.memory_space<vmem>>, vector<1x8x8xf32>
    %13 = vector.shape_cast %12 : vector<1x8x8xf32> to vector<8x8xf32>
    %14 = vector.extract_strided_slice %1 {offsets = [0, 0], sizes = [8, 32], strides = [1, 1]} : vector<16x32xf32> to vector<8x32xf32>
    %15 = vector.extract_strided_slice %7 {offsets = [0, 0], sizes = [8, 64], strides = [1, 1]} : vector<16x128xf32> to vector<8x64xf32>
    %16 = vector.extract_strided_slice %9 {offsets = [0, 0], sizes = [8, 64], strides = [1, 1]} : vector<16x128xf32> to vector<8x64xf32>
    %17 = vector.extract_strided_slice %11 {offsets = [0, 0], sizes = [8, 64], strides = [1, 1]} : vector<16x128xf32> to vector<8x64xf32>
    %cst_17 = arith.constant dense<0.000000e+00> : vector<8x8xf32>
    %18 = tpu.matmul %15, %16, %cst_17 {dimension_numbers = #tpu.dot_dimension_numbers<[1], [1], [0], [0], [0, 0, 1, 0], [], []>} : vector<8x64xf32>, vector<8x64xf32>, vector<8x8xf32> -> vector<8x8xf32>
    %19 = arith.minimumf %18, %13 : vector<8x8xf32>
    %cst_18 = arith.constant dense<0xFF800000> : vector<8xf32>
    %20 = vector.multi_reduction <maximumf>, %19, %cst_18 [1] : vector<8x8xf32> to vector<8xf32>
    %21 = vector.shape_cast %20 : vector<8xf32> to vector<8x1xf32>
    %22 = vector.broadcast %21 : vector<8x1xf32> to vector<8x8xf32>
    %23 = arith.subf %19, %22 : vector<8x8xf32>
    %24 = math.exp %23 : vector<8x8xf32>
    %cst_19 = arith.constant dense<0.000000e+00> : vector<8xf32>
    %25 = vector.multi_reduction <add>, %24, %cst_19 [1] : vector<8x8xf32> to vector<8xf32>
    %26 = vector.shape_cast %25 : vector<8xf32> to vector<8x1xf32>
    %27 = tpu.reciprocal %26 {approx = true} : vector<8x1xf32> -> vector<8x1xf32>
    %28 = arith.mulf %26, %27 : vector<8x1xf32>
    %cst_20 = arith.constant 2.000000e+00 : f32
    %29 = vector.broadcast %cst_20 : f32 to vector<8x1xf32>
    %30 = arith.subf %29, %28 : vector<8x1xf32>
    %31 = arith.mulf %27, %30 : vector<8x1xf32>
    %32 = vector.broadcast %31 : vector<8x1xf32> to vector<8x8xf32>
    %33 = arith.mulf %24, %32 : vector<8x8xf32>
    %c0_21 = arith.constant 0 : index
    %c0_22 = arith.constant 0 : index
    %c0_23 = arith.constant 0 : index
    %c0_24 = arith.constant 0 : index
    %34 = vector.load %arg8[%c0_21, %c0_22, %c0_23, %c0_24] : memref<2x2x8x8xf32, #tpu.memory_space<vmem>>, vector<1x1x8x8xf32>
    %35 = vector.shape_cast %34 : vector<1x1x8x8xf32> to vector<8x8xf32>
    %36 = vector.shape_cast %33 : vector<8x8xf32> to vector<1x1x8x8xf32>
    tpu.vector_store %arg8[%c0_21, %c0_22, %c0_23, %c0_24], %36 {strides = array<i32>} : memref<2x2x8x8xf32, #tpu.memory_space<vmem>>, vector<1x1x8x8xf32>,
    %cst_25 = arith.constant dense<0.000000e+00> : vector<8x64xf32>
    %37 = tpu.matmul %33, %17, %cst_25 {dimension_numbers = #tpu.dot_dimension_numbers<[1], [0], [0], [1], [0, 0, 1, 1], [], []>} : vector<8x8xf32>, vector<8x64xf32>, vector<8x64xf32> -> vector<8x64xf32>
    %c0_26 = arith.constant 0 : index
    %c0_27 = arith.constant 0 : index
    %38 = vector.load %arg6[%c0_26, %c0_27] : memref<128x32xf32, #tpu.memory_space<vmem>>, vector<64x32xf32>
    %cst_28 = arith.constant dense<0.000000e+00> : vector<8x32xf32>
    %39 = tpu.matmul %37, %38, %cst_28 {dimension_numbers = #tpu.dot_dimension_numbers<[1], [0], [0], [1], [0, 0, 1, 1], [], []>} : vector<8x64xf32>, vector<64x32xf32>, vector<8x32xf32> -> vector<8x32xf32>
    %40 = arith.addf %14, %39 : vector<8x32xf32>
    %41 = vector.extract_strided_slice %7 {offsets = [0, 64], sizes = [8, 64], strides = [1, 1]} : vector<16x128xf32> to vector<8x64xf32>
    %42 = vector.extract_strided_slice %9 {offsets = [0, 64], sizes = [8, 64], strides = [1, 1]} : vector<16x128xf32> to vector<8x64xf32>
    %43 = vector.extract_strided_slice %11 {offsets = [0, 64], sizes = [8, 64], strides = [1, 1]} : vector<16x128xf32> to vector<8x64xf32>
    %cst_29 = arith.constant dense<0.000000e+00> : vector<8x8xf32>
    %44 = tpu.matmul %41, %42, %cst_29 {dimension_numbers = #tpu.dot_dimension_numbers<[1], [1], [0], [0], [0, 0, 1, 0], [], []>} : vector<8x64xf32>, vector<8x64xf32>, vector<8x8xf32> -> vector<8x8xf32>
    %45 = arith.minimumf %44, %13 : vector<8x8xf32>
    %cst_30 = arith.constant dense<0xFF800000> : vector<8xf32>
    %46 = vector.multi_reduction <maximumf>, %45, %cst_30 [1] : vector<8x8xf32> to vector<8xf32>
    %47 = vector.shape_cast %46 : vector<8xf32> to vector<8x1xf32>
    %48 = vector.broadcast %47 : vector<8x1xf32> to vector<8x8xf32>
    %49 = arith.subf %45, %48 : vector<8x8xf32>
    %50 = math.exp %49 : vector<8x8xf32>
    %cst_31 = arith.constant dense<0.000000e+00> : vector<8xf32>
    %51 = vector.multi_reduction <add>, %50, %cst_31 [1] : vector<8x8xf32> to vector<8xf32>
    %52 = vector.shape_cast %51 : vector<8xf32> to vector<8x1xf32>
    %53 = tpu.reciprocal %52 {approx = true} : vector<8x1xf32> -> vector<8x1xf32>
    %54 = arith.mulf %52, %53 : vector<8x1xf32>
    %cst_32 = arith.constant 2.000000e+00 : f32
    %55 = vector.broadcast %cst_32 : f32 to vector<8x1xf32>
    %56 = arith.subf %55, %54 : vector<8x1xf32>
    %57 = arith.mulf %53, %56 : vector<8x1xf32>
    %58 = vector.broadcast %57 : vector<8x1xf32> to vector<8x8xf32>
    %59 = arith.mulf %50, %58 : vector<8x8xf32>
    %c0_33 = arith.constant 0 : index
    %c1 = arith.constant 1 : index
    %c0_34 = arith.constant 0 : index
    %c0_35 = arith.constant 0 : index
    %60 = vector.load %arg8[%c0_33, %c1, %c0_34, %c0_35] : memref<2x2x8x8xf32, #tpu.memory_space<vmem>>, vector<1x1x8x8xf32>
    %61 = vector.shape_cast %60 : vector<1x1x8x8xf32> to vector<8x8xf32>
    %62 = vector.shape_cast %59 : vector<8x8xf32> to vector<1x1x8x8xf32>
    tpu.vector_store %arg8[%c0_33, %c1, %c0_34, %c0_35], %62 {strides = array<i32>} : memref<2x2x8x8xf32, #tpu.memory_space<vmem>>, vector<1x1x8x8xf32>,
    %cst_36 = arith.constant dense<0.000000e+00> : vector<8x64xf32>
    %63 = tpu.matmul %59, %43, %cst_36 {dimension_numbers = #tpu.dot_dimension_numbers<[1], [0], [0], [1], [0, 0, 1, 1], [], []>} : vector<8x8xf32>, vector<8x64xf32>, vector<8x64xf32> -> vector<8x64xf32>
    %c64 = arith.constant 64 : index
    %c0_37 = arith.constant 0 : index
    %64 = vector.load %arg6[%c64, %c0_37] : memref<128x32xf32, #tpu.memory_space<vmem>>, vector<64x32xf32>
    %cst_38 = arith.constant dense<0.000000e+00> : vector<8x32xf32>
    %65 = tpu.matmul %63, %64, %cst_38 {dimension_numbers = #tpu.dot_dimension_numbers<[1], [0], [0], [1], [0, 0, 1, 1], [], []>} : vector<8x64xf32>, vector<64x32xf32>, vector<8x32xf32> -> vector<8x32xf32>
    %66 = arith.addf %40, %65 : vector<8x32xf32>
    %c1_39 = arith.constant 1 : index
    %c0_40 = arith.constant 0 : index
    %c0_41 = arith.constant 0 : index
    %67 = vector.load %arg4[%c1_39, %c0_40, %c0_41] : memref<2x8x8xf32, #tpu.memory_space<vmem>>, vector<1x8x8xf32>
    %68 = vector.shape_cast %67 : vector<1x8x8xf32> to vector<8x8xf32>
    %69 = vector.extract_strided_slice %1 {offsets = [8, 0], sizes = [8, 32], strides = [1, 1]} : vector<16x32xf32> to vector<8x32xf32>
    %70 = vector.extract_strided_slice %7 {offsets = [8, 0], sizes = [8, 64], strides = [1, 1]} : vector<16x128xf32> to vector<8x64xf32>
    %71 = vector.extract_strided_slice %9 {offsets = [8, 0], sizes = [8, 64], strides = [1, 1]} : vector<16x128xf32> to vector<8x64xf32>
    %72 = vector.extract_strided_slice %11 {offsets = [8, 0], sizes = [8, 64], strides = [1, 1]} : vector<16x128xf32> to vector<8x64xf32>
    %cst_42 = arith.constant dense<0.000000e+00> : vector<8x8xf32>
    %73 = tpu.matmul %70, %71, %cst_42 {dimension_numbers = #tpu.dot_dimension_numbers<[1], [1], [0], [0], [0, 0, 1, 0], [], []>} : vector<8x64xf32>, vector<8x64xf32>, vector<8x8xf32> -> vector<8x8xf32>
    %74 = arith.minimumf %73, %68 : vector<8x8xf32>
    %cst_43 = arith.constant dense<0xFF800000> : vector<8xf32>
    %75 = vector.multi_reduction <maximumf>, %74, %cst_43 [1] : vector<8x8xf32> to vector<8xf32>
    %76 = vector.shape_cast %75 : vector<8xf32> to vector<8x1xf32>
    %77 = vector.broadcast %76 : vector<8x1xf32> to vector<8x8xf32>
    %78 = arith.subf %74, %77 : vector<8x8xf32>
    %79 = math.exp %78 : vector<8x8xf32>
    %cst_44 = arith.constant dense<0.000000e+00> : vector<8xf32>
    %80 = vector.multi_reduction <add>, %79, %cst_44 [1] : vector<8x8xf32> to vector<8xf32>
    %81 = vector.shape_cast %80 : vector<8xf32> to vector<8x1xf32>
    %82 = tpu.reciprocal %81 {approx = true} : vector<8x1xf32> -> vector<8x1xf32>
    %83 = arith.mulf %81, %82 : vector<8x1xf32>
    %cst_45 = arith.constant 2.000000e+00 : f32
    %84 = vector.broadcast %cst_45 : f32 to vector<8x1xf32>
    %85 = arith.subf %84, %83 : vector<8x1xf32>
    %86 = arith.mulf %82, %85 : vector<8x1xf32>
    %87 = vector.broadcast %86 : vector<8x1xf32> to vector<8x8xf32>
    %88 = arith.mulf %79, %87 : vector<8x8xf32>
    %c1_46 = arith.constant 1 : index
    %c0_47 = arith.constant 0 : index
    %c0_48 = arith.constant 0 : index
    %c0_49 = arith.constant 0 : index
    %89 = vector.load %arg8[%c1_46, %c0_47, %c0_48, %c0_49] : memref<2x2x8x8xf32, #tpu.memory_space<vmem>>, vector<1x1x8x8xf32>
    %90 = vector.shape_cast %89 : vector<1x1x8x8xf32> to vector<8x8xf32>
    %91 = vector.shape_cast %88 : vector<8x8xf32> to vector<1x1x8x8xf32>
    tpu.vector_store %arg8[%c1_46, %c0_47, %c0_48, %c0_49], %91 {strides = array<i32>} : memref<2x2x8x8xf32, #tpu.memory_space<vmem>>, vector<1x1x8x8xf32>,
    %cst_50 = arith.constant dense<0.000000e+00> : vector<8x64xf32>
    %92 = tpu.matmul %88, %72, %cst_50 {dimension_numbers = #tpu.dot_dimension_numbers<[1], [0], [0], [1], [0, 0, 1, 1], [], []>} : vector<8x8xf32>, vector<8x64xf32>, vector<8x64xf32> -> vector<8x64xf32>
    %c0_51 = arith.constant 0 : index
    %c0_52 = arith.constant 0 : index
    %93 = vector.load %arg6[%c0_51, %c0_52] : memref<128x32xf32, #tpu.memory_space<vmem>>, vector<64x32xf32>
    %cst_53 = arith.constant dense<0.000000e+00> : vector<8x32xf32>
    %94 = tpu.matmul %92, %93, %cst_53 {dimension_numbers = #tpu.dot_dimension_numbers<[1], [0], [0], [1], [0, 0, 1, 1], [], []>} : vector<8x64xf32>, vector<64x32xf32>, vector<8x32xf32> -> vector<8x32xf32>
    %95 = arith.addf %69, %94 : vector<8x32xf32>
    %96 = vector.extract_strided_slice %7 {offsets = [8, 64], sizes = [8, 64], strides = [1, 1]} : vector<16x128xf32> to vector<8x64xf32>
    %97 = vector.extract_strided_slice %9 {offsets = [8, 64], sizes = [8, 64], strides = [1, 1]} : vector<16x128xf32> to vector<8x64xf32>
    %98 = vector.extract_strided_slice %11 {offsets = [8, 64], sizes = [8, 64], strides = [1, 1]} : vector<16x128xf32> to vector<8x64xf32>
    %cst_54 = arith.constant dense<0.000000e+00> : vector<8x8xf32>
    %99 = tpu.matmul %96, %97, %cst_54 {dimension_numbers = #tpu.dot_dimension_numbers<[1], [1], [0], [0], [0, 0, 1, 0], [], []>} : vector<8x64xf32>, vector<8x64xf32>, vector<8x8xf32> -> vector<8x8xf32>
    %100 = arith.minimumf %99, %68 : vector<8x8xf32>
    %cst_55 = arith.constant dense<0xFF800000> : vector<8xf32>
    %101 = vector.multi_reduction <maximumf>, %100, %cst_55 [1] : vector<8x8xf32> to vector<8xf32>
    %102 = vector.shape_cast %101 : vector<8xf32> to vector<8x1xf32>
    %103 = vector.broadcast %102 : vector<8x1xf32> to vector<8x8xf32>
    %104 = arith.subf %100, %103 : vector<8x8xf32>
    %105 = math.exp %104 : vector<8x8xf32>
    %cst_56 = arith.constant dense<0.000000e+00> : vector<8xf32>
    %106 = vector.multi_reduction <add>, %105, %cst_56 [1] : vector<8x8xf32> to vector<8xf32>
    %107 = vector.shape_cast %106 : vector<8xf32> to vector<8x1xf32>
    %108 = tpu.reciprocal %107 {approx = true} : vector<8x1xf32> -> vector<8x1xf32>
    %109 = arith.mulf %107, %108 : vector<8x1xf32>
    %cst_57 = arith.constant 2.000000e+00 : f32
    %110 = vector.broadcast %cst_57 : f32 to vector<8x1xf32>
    %111 = arith.subf %110, %109 : vector<8x1xf32>
    %112 = arith.mulf %108, %111 : vector<8x1xf32>
    %113 = vector.broadcast %112 : vector<8x1xf32> to vector<8x8xf32>
    %114 = arith.mulf %105, %113 : vector<8x8xf32>
    %c1_58 = arith.constant 1 : index
    %c1_59 = arith.constant 1 : index
    %c0_60 = arith.constant 0 : index
    %c0_61 = arith.constant 0 : index
    %115 = vector.load %arg8[%c1_58, %c1_59, %c0_60, %c0_61] : memref<2x2x8x8xf32, #tpu.memory_space<vmem>>, vector<1x1x8x8xf32>
    %116 = vector.shape_cast %115 : vector<1x1x8x8xf32> to vector<8x8xf32>
    %117 = vector.shape_cast %114 : vector<8x8xf32> to vector<1x1x8x8xf32>
    tpu.vector_store %arg8[%c1_58, %c1_59, %c0_60, %c0_61], %117 {strides = array<i32>} : memref<2x2x8x8xf32, #tpu.memory_space<vmem>>, vector<1x1x8x8xf32>,
    %cst_62 = arith.constant dense<0.000000e+00> : vector<8x64xf32>
    %118 = tpu.matmul %114, %98, %cst_62 {dimension_numbers = #tpu.dot_dimension_numbers<[1], [0], [0], [1], [0, 0, 1, 1], [], []>} : vector<8x8xf32>, vector<8x64xf32>, vector<8x64xf32> -> vector<8x64xf32>
    %c64_63 = arith.constant 64 : index
    %c0_64 = arith.constant 0 : index
    %119 = vector.load %arg6[%c64_63, %c0_64] : memref<128x32xf32, #tpu.memory_space<vmem>>, vector<64x32xf32>
    %cst_65 = arith.constant dense<0.000000e+00> : vector<8x32xf32>
    %120 = tpu.matmul %118, %119, %cst_65 {dimension_numbers = #tpu.dot_dimension_numbers<[1], [0], [0], [1], [0, 0, 1, 1], [], []>} : vector<8x64xf32>, vector<64x32xf32>, vector<8x32xf32> -> vector<8x32xf32>
    %121 = arith.addf %95, %120 : vector<8x32xf32>
    %122 = tpu.concatenate %66, %121 in 0 : vector<8x32xf32>, vector<8x32xf32> -> vector<16x32xf32>
    %cst_66 = arith.constant dense<0.000000e+00> : vector<16xf32>
    %123 = vector.multi_reduction <add>, %122, %cst_66 [1] : vector<16x32xf32> to vector<16xf32>
    %124 = vector.shape_cast %123 : vector<16xf32> to vector<16x1xf32>
    %cst_67 = arith.constant 3.200000e+01 : f32
    %125 = vector.broadcast %cst_67 : f32 to vector<16x1xf32>
    %126 = arith.divf %124, %125 : vector<16x1xf32>
    %127 = vector.broadcast %126 : vector<16x1xf32> to vector<16x32xf32>
    %128 = arith.subf %122, %127 : vector<16x32xf32>
    %129 = arith.mulf %128, %128 : vector<16x32xf32>
    %cst_68 = arith.constant dense<0.000000e+00> : vector<16xf32>
    %130 = vector.multi_reduction <add>, %129, %cst_68 [1] : vector<16x32xf32> to vector<16xf32>
    %131 = vector.shape_cast %130 : vector<16xf32> to vector<16x1xf32>
    %cst_69 = arith.constant 3.200000e+01 : f32
    %132 = vector.broadcast %cst_69 : f32 to vector<16x1xf32>
    %133 = arith.divf %131, %132 : vector<16x1xf32>
    %134 = vector.broadcast %126 : vector<16x1xf32> to vector<16x32xf32>
    %135 = arith.subf %122, %134 : vector<16x32xf32>
    %cst_70 = arith.constant 9.99999974E-6 : f32
    %136 = vector.broadcast %cst_70 : f32 to vector<16x1xf32>
    %137 = arith.addf %133, %136 : vector<16x1xf32>
    %138 = math.rsqrt %137 : vector<16x1xf32>
    %139 = vector.broadcast %138 : vector<16x1xf32> to vector<16x32xf32>
    %140 = arith.mulf %135, %139 : vector<16x32xf32>
    %141 = vector.shape_cast %140 : vector<16x32xf32> to vector<2x8x32xf32>
    %c0_71 = arith.constant 0 : index
    %c0_72 = arith.constant 0 : index
    %c0_73 = arith.constant 0 : index
    %142 = vector.load %arg7[%c0_71, %c0_72, %c0_73] : memref<2x8x32xf32, #tpu.memory_space<vmem>>, vector<2x8x32xf32>
    tpu.vector_store %arg7[%c0_71, %c0_72, %c0_73], %141 {strides = array<i32>} : memref<2x8x32xf32, #tpu.memory_space<vmem>>, vector<2x8x32xf32>,
    return
  }
  func.func @transform_0(%arg0: i32) -> (i32, i32, i32) {
    %c0_i32 = arith.constant 0 : i32
    %c0_i32_0 = arith.constant 0 : i32
    %c0_i32_1 = arith.constant 0 : i32
    return %arg0, %c0_i32, %c0_i32_0 : i32, i32, i32
  }
  func.func @transform_1(%arg0: i32) -> (i32, i32, i32) {
    %c0_i32 = arith.constant 0 : i32
    %c0_i32_0 = arith.constant 0 : i32
    %c0_i32_1 = arith.constant 0 : i32
    return %arg0, %c0_i32, %c0_i32_0 : i32, i32, i32
  }
  func.func @transform_2(%arg0: i32) -> (i32, i32, i32) {
    %c0_i32 = arith.constant 0 : i32
    %c0_i32_0 = arith.constant 0 : i32
    %c0_i32_1 = arith.constant 0 : i32
    return %arg0, %c0_i32, %c0_i32_0 : i32, i32, i32
  }
  func.func @transform_3(%arg0: i32) -> (i32, i32, i32) {
    %c0_i32 = arith.constant 0 : i32
    %c0_i32_0 = arith.constant 0 : i32
    %c0_i32_1 = arith.constant 0 : i32
    return %arg0, %c0_i32, %c0_i32_0 : i32, i32, i32
  }
  func.func @transform_4(%arg0: i32) -> (i32, i32) {
    %c0_i32 = arith.constant 0 : i32
    %c0_i32_0 = arith.constant 0 : i32
    %c0_i32_1 = arith.constant 0 : i32
    return %c0_i32, %c0_i32_0 : i32, i32
  }
  func.func @transform_5(%arg0: i32) -> (i32, i32) {
    %c0_i32 = arith.constant 0 : i32
    %c0_i32_0 = arith.constant 0 : i32
    %c0_i32_1 = arith.constant 0 : i32
    return %c0_i32, %c0_i32_0 : i32, i32
  }
  func.func @transform_6(%arg0: i32) -> (i32, i32, i32) {
    %c0_i32 = arith.constant 0 : i32
    %c0_i32_0 = arith.constant 0 : i32
    %c0_i32_1 = arith.constant 0 : i32
    return %arg0, %c0_i32, %c0_i32_0 : i32, i32, i32
  }
  func.func @transform_7(%arg0: i32) -> (i32, i32, i32, i32) {
    %c0_i32 = arith.constant 0 : i32
    %c0_i32_0 = arith.constant 0 : i32
    %c0_i32_1 = arith.constant 0 : i32
    %c0_i32_2 = arith.constant 0 : i32
    return %arg0, %c0_i32, %c0_i32_0, %c0_i32_1 : i32, i32, i32, i32
  }
}

</mosaic_0001>

<bundles_post_ra>
// kernel: tpu_custom_call.1
= control target key start
LH: loop header
LB: loop body
LE: loop exit
PB: predicated region body
PF: predicated region fallthrough
CT: control target
= control target key end

     0   :  { %13 = vsyncpa [#allocation3], 0  ;;  %vm37_vm0 = vcmask 261120   ;;  %s2030_s0 = inlined_call_operand.vmem [shape: f32[2,8,32], index: 0, kind: input, shape index: {}]   ;;  %s2031_s1 = inlined_call_operand.vmem [shape: f32[2,8,32], index: 1, kind: input, shape index: {}]   ;;  %s2032_s2 = inlined_call_operand.vmem [shape: f32[2,8,32], index: 2, kind: input, shape index: {}]   ;;  %s2033_s3 = inlined_call_operand.vmem [shape: f32[2,8,8], index: 3, kind: input, shape index: {}]   ;;  %s2034_s4 = inlined_call_operand.vmem [shape: f32[32,384], index: 4, kind: input, shape index: {}]   ;;  %s2035_s5 = inlined_call_operand.vmem [shape: f32[128,32], index: 5, kind: input, shape index: {}]   ;;  %s2036_s6 = inlined_call_operand.hbm [shape: f32[2,8,32], index: 6, kind: output, shape index: {0}]   ;;  %s2037_s7 = inlined_call_operand.hbm [shape: f32[2,2,8,8], index: 7, kind: output, shape index: {1}]  }
   0x1   :  { %v122_v0 = vld [vmem:[%s2034_s4 + $0x50] sm:$0xff]  ;;  %v36_v1 = vld [vmem:[%s2034_s4 + $0x48] sm:$0xff]  ;;  %v121_v2 = vld [vmem:[%s2034_s4 + $0x38] sm:$0xff] }
   0x2   :  { %1462 = vmatprep.subr.mxu1 %v122_v0  ;;  %1451 = vmatprep.subr.mxu0 %v36_v1  ;;  %v35_v3 = vld [vmem:[%s2034_s4 + $0x30] sm:$0xff]  ;;  %v120_v4 = vld [vmem:[%s2034_s4 + $0x20] sm:$0xff]  ;;  %v34_v5 = vld [vmem:[%s2034_s4 + $0x18] sm:$0xff] }
   0x3   :  { %1463 = vmatpush3.msra.mxu1 %v122_v0  ;;  %1452 = vmatpush3.msra.mxu0 %v36_v1  ;;  %v119_v6 = vld [vmem:[%s2034_s4 + $0x8] sm:$0xff]  ;;  %v29_v7 = vld [vmem:[%s2031_s1] sm:$0xff] }
   0x4   :  { %1464 = vmatprep.subr.mxu1 %v121_v2  ;;  %1453 = vmatprep.subr.mxu0 %v35_v3  ;;  %v33_v8 = vld [vmem:[%s2034_s4] sm:$0xff] }
   0x5   :  { %1465 = vmatpush3.msra.mxu1 %v121_v2  ;;  %1454 = vmatpush3.msra.mxu0 %v35_v3 }
   0x6   :  { %1466 = vmatprep.subr.mxu1 %v120_v4  ;;  %1455 = vmatprep.subr.mxu0 %v34_v5 }
   0x7   :  { %14 = vsyncpa [#allocation5], 0  ;;  %1467 = vmatpush3.msra.mxu1 %v120_v4  ;;  %1456 = vmatpush3.msra.mxu0 %v34_v5  ;;  %v30_v9 = vld [vmem:[%s2031_s1 + $0x8] sm:$0xff]  ;;  %v1752_v10 = vld [vmem:[%s2030_s0] sm:$0xff]  ;;  %v1671_v18 = vmov 0.0   ;;  %vm1672_vm1 = vmmov 0  }
   0x8   :  { %1468 = vmatprep.subr.mxu1 %v119_v6  ;;  %1470 = vmatprep.mubr.msk.f32.mxu1 %vm37_vm0, %v29_v7  ;;  %v207_v11 = vld [vmem:[%s2034_s4 + $0x58] sm:$0xff]  ;;  %v1760_v12 = vld [vmem:[%s2030_s0 + $0x8] sm:$0xff]  ;;  %v206_v13 = vld [vmem:[%s2034_s4 + $0x40] sm:$0xff]  ;;  %vm290_vm2 = vcmask 523264   ;;  %vm368_vm3 = vcmask 64512  }
   0x9   :  { %1469 = vmatpush3.msra.mxu1 %v119_v6  ;;  %1457 = vmatprep.subr.mxu0 %v33_v8  ;;  %v205_v14 = vld [vmem:[%s2034_s4 + $0x28] sm:$0xff]  ;;  %v204_v15 = vld [vmem:[%s2034_s4 + $0x10] sm:$0xff]  ;;  %v31_v16 = vld [vmem:[%s2032_s2] sm:$0xff] }
   0xa   :  { %1471 = vmatmul.mubr.msk.f32.vlgmr.msra.gmra.mxu1 %vm37_vm0, %v30_v9  ;;  %1458 = vmatpush3.msra.mxu0 %v33_v8  ;;  %v32_v17 = vld [vmem:[%s2032_s2 + $0x8] sm:$0xff]  ;;  %s1673_s2 = smov 64   ;;  %v289_v25 = vld [vmem:[%s2033_s3] sm:$0xff]  ;;  %v1815_v35 = vld [vmem:[%s2035_s5 + $0x38] sm:$0xff] }
   0xb   :  { %1459 = vmatprep.mubr.msk.f32.mxu0 %vm37_vm0, %v1752_v10  ;;  %1473 = vmatprep.subr.mxu0 %v207_v11  ;;  %v1820_v36 = vld [vmem:[%s2035_s5 + $0x30] sm:$0xff]  ;;  %v1827_v37 = vld [vmem:[%s2035_s5 + $0x28] sm:$0xff]  ;;  %v1834_v38 = vld [vmem:[%s2035_s5 + $0x20] sm:$0xff] }
   0xc   :  { %1460 = vmatmul.mubr.msk.f32.vlgmr.msra.gmra.mxu0 %vm37_vm0, %v1760_v12  ;;  %1489 = vmatprep.subr.mxu1 %v1671_v18  ;;  %v1841_v39 = vld [vmem:[%s2035_s5 + $0x18] sm:$0xff]  ;;  %v1848_v40 = vld [vmem:[%s2035_s5 + $0x10] sm:$0xff]  ;;  %v1855_v41 = vld [vmem:[%s2035_s5 + $0x8] sm:$0xff] }
   0xd   :  { %1474 = vmatpush3.msra.mxu0 %v207_v11  ;;  %1481 = vmatprep.mubr.msk.f32.mxu0 %vm37_vm0, %v31_v16  ;;  %v1862_v42 = vld [vmem:[%s2035_s5] sm:$0xff]  ;;  %v1372_v1 = vld [vmem:[%s2033_s3 + $0x8] sm:$0xff] }
   0xe   :  { %1475 = vmatprep.subr.mxu0 %v206_v13  ;;  %1491 = vmatprep.mubr.msk.f32.mxu1 %vm1672_vm1, %v1671_v18  ;;  %v1921_v16 = vld [vmem:[%s2035_s5 + $0x68] sm:$0xff] }
   0xf   :  { %1476 = vmatpush3.msra.mxu0 %v206_v13 }
  0x10   :  { %1477 = vmatprep.subr.mxu0 %v205_v14 }
  0x11   :  { %1478 = vmatpush3.msra.mxu0 %v205_v14  ;;  %v1905_v14 = vld [vmem:[%s2035_s5 + $0x78] sm:$0xff] }
  0x12   :  { %1479 = vmatprep.subr.mxu0 %v204_v15 }
  0x13   :  { %1480 = vmatpush3.msra.mxu0 %v204_v15  ;;  %v1912_v15 = vld [vmem:[%s2035_s5 + $0x70] sm:$0xff] }
  0x14   :  { %1482 = vmatmul.mubr.msk.f32.vlgmr.msra.gmra.mxu0 %vm37_vm0, %v32_v17  ;;  %1484 = vmatprep.subr.mxu0 %v1671_v18  ;;  %v1928_v17 = vld [vmem:[%s2035_s5 + $0x60] sm:$0xff] }
  0x15   :  { %1486 = vmatprep.mubr.msk.f32.mxu0 %vm1672_vm1, %v1671_v18 }
  0xca   :  { %v1790_v19 = vpop.f32.mrf.mxu1 }
  0xcc   :  { %v1792_v20 = vpop.f32.mrf.mxu0  ;;  %v195_v21 = vpop.f32.mrf.mxu1 }
  0xcd   :  { %541 = vrot.lane.b32.xlu1 %v195_v21, %s1673_s2  ;;  %1485 = vmatpush3.xpose.msk.msra.mxu0 %vm290_vm2, %v195_v21  ;;  %v1949_v21 = vld [vmem:[%s2035_s5 + $0x48] sm:$0xff] }
  0xce   :  { %1494 = vmatprep.subr.mxu0 %v1671_v18  ;;  %v110_v22 = vpop.f32.mrf.mxu0 }
  0xd0   :  { %1487 = vmatmul.mubr.msk.f32.vlgmr.msra.gmra.mxu0 %vm290_vm2, %v110_v22 }
  0xd1   :  { %539 = vrot.lane.b32.xlu1 %v110_v22, %s1673_s2  ;;  %1510 = vmatprep.mubr.msk.f32.mxu0 %vm1672_vm1, %v1671_v18  ;;  %v1956_v22 = vld [vmem:[%s2035_s5 + $0x40] sm:$0xff] }
  0xd2   :  { %1495 = vmatpush3.msra.mxu0 %v1815_v35 }
  0xd3   :  { %1496 = vmatprep.subr.mxu0 %v1671_v18 }
  0xd4   :  { %v1801_v23 = vpop.f32.mrf.mxu0  ;;  %1497 = vmatpush3.msra.mxu0 %v1820_v36 }
  0xd5   :  { %1498 = vmatprep.subr.mxu0 %v1671_v18 }
  0xd6   :  { %v1803_v24 = vpop.f32.mrf.mxu0  ;;  %1499 = vmatpush3.msra.mxu0 %v1827_v37 }
  0xd7   :  { %1490 = vmatpush3.msra.mxu1 %v1803_v24  ;;  %1500 = vmatprep.subr.mxu0 %v1671_v18 }
  0xd8   :  { %1513 = vmatprep.subr.mxu1 %v1671_v18  ;;  %1501 = vmatpush3.msra.mxu0 %v1834_v38 }
  0xd9   :  { %1502 = vmatprep.subr.mxu0 %v1671_v18 }
  0xda   :  { %1503 = vmatpush3.msra.mxu0 %v1841_v39 }
  0xdb   :  { %1504 = vmatprep.subr.mxu0 %v1671_v18 }
  0xdc   :  { %1505 = vmatpush3.msra.mxu0 %v1848_v40 }
  0xdd   :  { %1506 = vmatprep.subr.mxu0 %v1671_v18 }
  0xde   :  { %1507 = vmatpush3.msra.mxu0 %v1855_v41 }
  0xdf   :  { %1508 = vmatprep.subr.mxu0 %v1671_v18 }
  0xe0   :  { %1509 = vmatpush3.msra.mxu0 %v1862_v42 }
  0xe1   :  { %1542 = vmatprep.subr.mxu0 %v1671_v18 }
 0x13f   :  { %v542_v48 = vpop.permute.xlu1 %541 }
 0x143   :  { %v540_v50 = vpop.permute.xlu1 %539 }
 0x190   :  { %v363_v26 = vpop.f32.mrf.mxu0 }
 0x191   :  { %v367_v27 = vmin.f32 %v363_v26, %v289_v25 }
 0x192   :  { %v1488_v28 = vpop.f32.mrf.mxu0 }
 0x193   :  { %v369_v29 = vsel %vm368_vm3, %v367_v27, -inf }
 0x194   :  { %370 = vmax.xlane.f32.xlu0 %v369_v29 }
 0x21d   :  { %v371_v30 = vpop.xlane.xlu0 %370 }
 0x21e   :  { %v372_v31 = vsub.f32 %v367_v27, %v371_v30 }
 0x220   :  { %v373_v32 = vmul.f32 1.442695, %v372_v31 }
 0x222   :  { %1607 = vpow2.f32 %v373_v32 }
 0x22f   :  { %v1608_v33 = vpop.eup %1607 }
 0x230   :  { %v375_v34 = vsel %vm368_vm3, %v1608_v33, 0.0 }
 0x231   :  { %376 = vadd.xlane.f32.xlu0 %v375_v34 }
 0x2ba   :  { %v377_v43 = vpop.xlane.xlu0 %376 }
 0x2bb   :  { %1609 = vrcp.f32 %v377_v43 }
 0x2c8   :  { %v1610_v44 = vpop.eup %1609 }
 0x2c9   :  { %v379_v45 = vmul.f32 %v1610_v44, %v377_v43 }
 0x2cb   :  { %v380_v46 = vsub.f32 2.0, %v379_v45 }
 0x2cd   :  { %v381_v47 = vmul.f32 %v1610_v44, %v380_v46 }
 0x2cf   :  { %v382_v49 = vmul.f32 %v1608_v33, %v381_v47 }
 0x2d1   :  { %383 = vst.msk [vmem:[#allocation4] sm:$0xff] %vm368_vm3, %v382_v49  ;;  %1492 = vmatmul.mubr.msk.f32.vlgmr.msra.gmra.mxu1 %vm368_vm3, %v382_v49 }
 0x2d2   :  { %1514 = vmatpush3.xpose.msk.msra.mxu1 %vm290_vm2, %v542_v48  ;;  %1515 = vmatprep.mubr.msk.f32.mxu1 %vm1672_vm1, %v1671_v18 }
 0x2d3   :  { %1518 = vmatprep.subr.mxu1 %v1671_v18 }
 0x2d5   :  { %1516 = vmatmul.mubr.msk.f32.vlgmr.msra.gmra.mxu1 %vm290_vm2, %v540_v50 }
 0x2d6   :  { %1520 = vmatprep.mubr.msk.f32.mxu1 %vm1672_vm1, %v1671_v18 }
 0x391   :  { %v453_v51 = vpop.f32.mrf.mxu1 }
 0x392   :  { %1511 = vmatmul.mubr.msk.f32.vlgmr.msra.gmra.mxu0 %vm290_vm2, %v453_v51 }
 0x393   :  { %1543 = vmatpush3.xpose.msk.msra.mxu0 %vm290_vm2, %v1790_v19  ;;  %v1493_v52 = vpop.f32.mrf.mxu1  ;;  %1544 = vmatprep.mubr.msk.f32.mxu0 %vm1672_vm1, %v1671_v18 }
 0x394   :  { %1547 = vmatprep.subr.mxu0 %v1671_v18 }
 0x395   :  { %v613_v53 = vpop.f32.mrf.mxu1 }
 0x396   :  { %v617_v54 = vmin.f32 %v613_v53, %v289_v25  ;;  %1545 = vmatmul.mubr.msk.f32.vlgmr.msra.gmra.mxu0 %vm290_vm2, %v1792_v20 }
 0x397   :  { %1548 = vmatpush3.msra.mxu0 %v1801_v23  ;;  %v1517_v55 = vpop.f32.mrf.mxu1  ;;  %1549 = vmatprep.mubr.msk.f32.mxu0 %vm1672_vm1, %v1671_v18 }
 0x398   :  { %v618_v56 = vsel %vm368_vm3, %v617_v54, -inf  ;;  %1552 = vmatprep.subr.mxu0 %v1671_v18 }
 0x399   :  { %619 = vmax.xlane.f32.xlu0 %v618_v56 }
 0x3af   :  { %635 = vrot.lane.b32.xlu0 %v1803_v24, %s1673_s2 }
 0x3b3   :  { %1045 = vrot.lane.b32.xlu0 %v1790_v19, %s1673_s2  ;;  %v1935_v19 = vld [vmem:[%s2035_s5 + $0x58] sm:$0xff] }
 0x3b7   :  { %1043 = vrot.lane.b32.xlu0 %v1792_v20, %s1673_s2  ;;  %v1942_v20 = vld [vmem:[%s2035_s5 + $0x50] sm:$0xff]  ;;  %s1674_s5 = smov [#allocation4]  }
 0x422   :  { %v620_v57 = vpop.xlane.xlu0 %619 }
 0x423   :  { %v621_v58 = vsub.f32 %v617_v54, %v620_v57 }
 0x425   :  { %v622_v59 = vmul.f32 1.442695, %v621_v58 }
 0x426   :  { %v636_v60 = vpop.permute.xlu0 %635 }
 0x427   :  { %1611 = vpow2.f32 %v622_v59  ;;  %1519 = vmatpush3.msra.mxu1 %v636_v60 }
 0x428   :  { %1523 = vmatprep.subr.mxu1 %v1671_v18 }
 0x42a   :  { %v1046_v24 = vpop.permute.xlu0 %1045 }
 0x42e   :  { %v1044_v27 = vpop.permute.xlu0 %1043 }
 0x434   :  { %v1612_v61 = vpop.eup %1611 }
 0x435   :  { %v624_v62 = vsel %vm368_vm3, %v1612_v61, 0.0 }
 0x436   :  { %625 = vadd.xlane.f32.xlu1 %v624_v62 }
 0x452   :  { %v534_v63 = vpop.f32.mrf.mxu0 }
 0x453   :  { %v538_v31 = vadd.f32 %v534_v63, %v1752_v10 }
 0x454   :  { %v1512_v0 = vpop.f32.mrf.mxu0 }
 0x456   :  { %v867_v2 = vpop.f32.mrf.mxu0 }
 0x457   :  { %v871_v3 = vmin.f32 %v867_v2, %v1372_v1 }
 0x458   :  { %v1546_v4 = vpop.f32.mrf.mxu0 }
 0x459   :  { %v872_v5 = vsel %vm368_vm3, %v871_v3, -inf }
 0x45a   :  { %873 = vmax.xlane.f32.xlu0 %v872_v5 }
 0x4bf   :  { %v626_v6 = vpop.xlane.xlu1 %625 }
 0x4c0   :  { %1613 = vrcp.f32 %v626_v6 }
 0x4cd   :  { %v1614_v7 = vpop.eup %1613 }
 0x4ce   :  { %v628_v8 = vmul.f32 %v1614_v7, %v626_v6 }
 0x4d0   :  { %v629_v9 = vsub.f32 2.0, %v628_v8 }
 0x4d2   :  { %v630_v11 = vmul.f32 %v1614_v7, %v629_v9 }
 0x4d4   :  { %v631_v13 = vmul.f32 %v1612_v61, %v630_v11 }
 0x4d6   :  { %633 = vst.msk [vmem:[#allocation4 + $0x8] sm:$0xff] %vm368_vm3, %v631_v13  ;;  %1521 = vmatmul.mubr.msk.f32.vlgmr.msra.gmra.mxu1 %vm368_vm3, %v631_v13 }
 0x4d7   :  { %1524 = vmatpush3.msra.mxu1 %v1905_v14  ;;  %1539 = vmatprep.mubr.msk.f32.mxu1 %vm1672_vm1, %v1671_v18 }
 0x4d8   :  { %1525 = vmatprep.subr.mxu1 %v1671_v18 }
 0x4d9   :  { %1526 = vmatpush3.msra.mxu1 %v1912_v15 }
 0x4da   :  { %1527 = vmatprep.subr.mxu1 %v1671_v18 }
 0x4db   :  { %1528 = vmatpush3.msra.mxu1 %v1921_v16 }
 0x4dc   :  { %1529 = vmatprep.subr.mxu1 %v1671_v18 }
 0x4dd   :  { %1530 = vmatpush3.msra.mxu1 %v1928_v17 }
 0x4de   :  { %1531 = vmatprep.subr.mxu1 %v1671_v18 }
 0x4df   :  { %1532 = vmatpush3.msra.mxu1 %v1935_v19 }
 0x4e0   :  { %1533 = vmatprep.subr.mxu1 %v1671_v18 }
 0x4e1   :  { %1534 = vmatpush3.msra.mxu1 %v1942_v20 }
 0x4e2   :  { %1535 = vmatprep.subr.mxu1 %v1671_v18 }
 0x4e3   :  { %1536 = vmatpush3.msra.mxu1 %v1949_v21  ;;  %v874_v28 = vpop.xlane.xlu0 %873 }
 0x4e4   :  { %1537 = vmatprep.subr.mxu1 %v1671_v18  ;;  %v875_v29 = vsub.f32 %v871_v3, %v874_v28 }
 0x4e5   :  { %1538 = vmatpush3.msra.mxu1 %v1956_v22 }
 0x4e6   :  { %1571 = vmatprep.subr.mxu1 %v1671_v18  ;;  %v876_v30 = vmul.f32 1.442695, %v875_v29 }
 0x4e8   :  { %1615 = vpow2.f32 %v876_v30 }
 0x4f5   :  { %v1616_v48 = vpop.eup %1615 }
 0x4f6   :  { %v878_v49 = vsel %vm368_vm3, %v1616_v48, 0.0 }
 0x596   :  { %v707_v25 = vpop.f32.mrf.mxu1 }
 0x597   :  { %1540 = vmatmul.mubr.msk.f32.vlgmr.msra.gmra.mxu1 %vm290_vm2, %v707_v25 }
 0x598   :  { %1572 = vmatpush3.xpose.msk.msra.mxu1 %vm290_vm2, %v1046_v24  ;;  %v1522_v26 = vpop.f32.mrf.mxu1  ;;  %1573 = vmatprep.mubr.msk.f32.mxu1 %vm1672_vm1, %v1671_v18 }
 0x599   :  { %1576 = vmatprep.subr.mxu1 %v1671_v18 }
 0x59b   :  { %1574 = vmatmul.mubr.msk.f32.vlgmr.msra.gmra.mxu1 %vm290_vm2, %v1044_v27 }
 0x59c   :  { %1578 = vmatprep.mubr.msk.f32.mxu1 %vm1672_vm1, %v1671_v18 }
 0x657   :  { %v788_v32 = vpop.f32.mrf.mxu1 }
 0x658   :  { %v792_v33 = vadd.f32 %v788_v32, %v538_v31 }
 0x659   :  { %v1541_v34 = vpop.f32.mrf.mxu1 }
 0x65a   :  { %v1297_v43 = vsel %vm37_vm0, %v792_v33, 0.0 }
 0x65b   :  { %v1117_v44 = vpop.f32.mrf.mxu1  ;;  %1298 = vadd.xlane.f32.xlu0 %v1297_v43 }
 0x65c   :  { %v1121_v45 = vmin.f32 %v1117_v44, %v1372_v1 }
 0x65d   :  { %v1575_v46 = vpop.f32.mrf.mxu1 }
 0x65e   :  { %v1122_v47 = vsel %vm368_vm3, %v1121_v45, -inf }
 0x65f   :  { %1123 = vmax.xlane.f32.xlu1 %v1122_v47 }
 0x663   :  { %879 = vadd.xlane.f32.xlu1 %v878_v49 }
 0x6e4   :  { %v1299_v50 = vpop.xlane.xlu0 %1298 }
 0x6e5   :  { %v1304_v51 = vmul.f32 0.03125, %v1299_v50 }
 0x6e7   :  { %v1306_v52 = vsub.f32 %v792_v33, %v1304_v51 }
 0x6e8   :  { %v1124_v10 = vpop.xlane.xlu1 %1123 }
 0x6e9   :  { %v1125_v53 = vsub.f32 %v1121_v45, %v1124_v10  ;;  %v1308_v54 = vmul.f32 %v1306_v52, %v1306_v52 }
 0x6eb   :  { %v1126_v55 = vmul.f32 1.442695, %v1125_v53  ;;  %v1310_v56 = vsel %vm37_vm0, %v1308_v54, 0.0 }
 0x6ec   :  { %v880_v57 = vpop.xlane.xlu1 %879  ;;  %1311 = vadd.xlane.f32.xlu0 %v1310_v56 }
 0x6ed   :  { %1617 = vpow2.f32 %v1126_v55 }
 0x6ee   :  { %1619 = vrcp.f32 %v880_v57 }
 0x6fa   :  { %v1618_v58 = vpop.eup %1617 }
 0x6fb   :  { %v1620_v59 = vpop.eup %1619  ;;  %v1128_v60 = vsel %vm368_vm3, %v1618_v58, 0.0 }
 0x6fc   :  { %v882_v61 = vmul.f32 %v1620_v59, %v880_v57  ;;  %1129 = vadd.xlane.f32.xlu1 %v1128_v60 }
 0x6fe   :  { %v883_v62 = vsub.f32 2.0, %v882_v61 }
 0x700   :  { %v884_v63 = vmul.f32 %v1620_v59, %v883_v62 }
 0x702   :  { %v885_v0 = vmul.f32 %v1616_v48, %v884_v63 }
 0x704   :  { %887 = vst.msk [vmem:[#allocation4 + $0x10] sm:$0xff] %vm368_vm3, %v885_v0  ;;  %1550 = vmatmul.mubr.msk.f32.vlgmr.msra.gmra.mxu0 %vm368_vm3, %v885_v0 }
 0x705   :  { %1553 = vmatpush3.msra.mxu0 %v1815_v35  ;;  %1568 = vmatprep.mubr.msk.f32.mxu0 %vm1672_vm1, %v1671_v18 }
 0x706   :  { %1554 = vmatprep.subr.mxu0 %v1671_v18 }
 0x707   :  { %1555 = vmatpush3.msra.mxu0 %v1820_v36 }
 0x708   :  { %1556 = vmatprep.subr.mxu0 %v1671_v18 }
 0x709   :  { %1557 = vmatpush3.msra.mxu0 %v1827_v37 }
 0x70a   :  { %1558 = vmatprep.subr.mxu0 %v1671_v18 }
 0x70b   :  { %1559 = vmatpush3.msra.mxu0 %v1834_v38 }
 0x70c   :  { %1560 = vmatprep.subr.mxu0 %v1671_v18 }
 0x70d   :  { %1139 = vrot.lane.b32.xlu1 %v1801_v23, %s1673_s2  ;;  %1561 = vmatpush3.msra.mxu0 %v1841_v39  ;;  %s1343_s2 = sshll.u32 %s1674_s5, 4  ;;  %s1344_s2 = int_to_ptr.vmem [resolvable:$true] %s1343_s2 }
 0x70e   :  { %1562 = vmatprep.subr.mxu0 %v1671_v18  ;;  %s1627_s20 = scalar_lea.vmem %s1344_s2, 512  ;;  %p1632_p1 = scmp.lt.s32.totalorder %s1344_s2, %s1344_s2 }
 0x70f   :  { %1563 = vmatpush3.msra.mxu0 %v1848_v40  ;;  %p1628_p0 = scmp.ne.s32.totalorder %s1344_s2, %s1627_s20  ;;  %p1633_p2 = scmp.lt.s32.totalorder %s1627_s20, %s1627_s20 }
 0x710   :  { %1564 = vmatprep.subr.mxu0 %v1671_v18 }
 0x711   :  { %1565 = vmatpush3.msra.mxu0 %v1855_v41  ;;  %p1634_p3 = por %p1633_p2, %p1632_p1 }
 0x712   :  { %1566 = vmatprep.subr.mxu0 %v1671_v18 }
 0x713   :  { %1567 = vmatpush3.msra.mxu0 %v1862_v42  ;;  %p1635_p4 = pnand %p1634_p3, %p1628_p0 }
 0x775   :  { %v1312_v35 = vpop.xlane.xlu0 %1311 }
 0x776   :  { %v1316_v36 = vmul.f32 0.03125, %v1312_v35 }
 0x778   :  { %v1318_v37 = vadd.f32 1e-05, %v1316_v36 }
 0x77a   :  { %1621 = vrsqrt.f32 %v1318_v37 }
 0x785   :  { %v1130_v38 = vpop.xlane.xlu1 %1129 }
 0x786   :  { %1623 = vrcp.f32 %v1130_v38 }
 0x787   :  { %v1622_v23 = vpop.eup %1621 }
 0x788   :  { %v1322_v39 = vmul.f32 %v1622_v23, %v1306_v52 }
 0x789   :  { %v1140_v1 = vpop.permute.xlu1 %1139 }
 0x78a   :  { %1577 = vmatpush3.msra.mxu1 %v1140_v1  ;;  %1324 = vst.msk [vmem:[#allocation2] sm:$0xff] %vm37_vm0, %v1322_v39 }
 0x78b   :  { %1581 = vmatprep.subr.mxu1 %v1671_v18 }
 0x793   :  { %v1624_v40 = vpop.eup %1623 }
 0x794   :  { %v1132_v41 = vmul.f32 %v1624_v40, %v1130_v38 }
 0x796   :  { %v1133_v2 = vsub.f32 2.0, %v1132_v41 }
 0x798   :  { %v1134_v3 = vmul.f32 %v1624_v40, %v1133_v2 }
 0x79a   :  { %v1135_v4 = vmul.f32 %v1618_v58, %v1134_v3 }
 0x79c   :  { %1137 = vst.msk [vmem:[#allocation4 + $0x18] sm:$0xff] %vm368_vm3, %v1135_v4  ;;  %1579 = vmatmul.mubr.msk.f32.vlgmr.msra.gmra.mxu1 %vm368_vm3, %v1135_v4 }
 0x79d   :  { %1582 = vmatpush3.msra.mxu1 %v1905_v14  ;;  %1597 = vmatprep.mubr.msk.f32.mxu1 %vm1672_vm1, %v1671_v18 }
 0x79e   :  { %1583 = vmatprep.subr.mxu1 %v1671_v18 }
 0x79f   :  { %1584 = vmatpush3.msra.mxu1 %v1912_v15 }
 0x7a0   :  { %1585 = vmatprep.subr.mxu1 %v1671_v18 }
 0x7a1   :  { %1586 = vmatpush3.msra.mxu1 %v1921_v16 }
 0x7a2   :  { %1587 = vmatprep.subr.mxu1 %v1671_v18 }
 0x7a3   :  { %1588 = vmatpush3.msra.mxu1 %v1928_v17 }
 0x7a4   :  { %1589 = vmatprep.subr.mxu1 %v1671_v18 }
 0x7a5   :  { %1590 = vmatpush3.msra.mxu1 %v1935_v19 }
 0x7a6   :  { %1591 = vmatprep.subr.mxu1 %v1671_v18 }
 0x7a7   :  { %1592 = vmatpush3.msra.mxu1 %v1942_v20 }
 0x7a8   :  { %1593 = vmatprep.subr.mxu1 %v1671_v18 }
 0x7a9   :  { %1594 = vmatpush3.msra.mxu1 %v1949_v21 }
 0x7aa   :  { %1595 = vmatprep.subr.mxu1 %v1671_v18 }
 0x7ab   :  { %1596 = vmatpush3.msra.mxu1 %v1956_v22 }
 0x7c4   :  { %v957_v42 = vpop.f32.mrf.mxu0 }
 0x7c5   :  { %1569 = vmatmul.mubr.msk.f32.vlgmr.msra.gmra.mxu0 %vm290_vm2, %v957_v42 }
 0x7c6   :  { %v1551_v5 = vpop.f32.mrf.mxu0 }
 0x85c   :  { %v1211_v6 = vpop.f32.mrf.mxu1 }
 0x85d   :  { %1598 = vmatmul.mubr.msk.f32.vlgmr.msra.gmra.mxu1 %vm290_vm2, %v1211_v6 }
 0x85e   :  { %v1580_v7 = vpop.f32.mrf.mxu1 }
 0x885   :  { %v1038_v8 = vpop.f32.mrf.mxu0 }
 0x886   :  { %v1042_v11 = vadd.f32 %v1038_v8, %v1760_v12 }
 0x887   :  { %v1570_v9 = vpop.f32.mrf.mxu0 }
 0x91d   :  { %v1292_v13 = vpop.f32.mrf.mxu1 }
 0x91e   :  { %v1296_v14 = vadd.f32 %v1292_v13, %v1042_v11 }
 0x91f   :  { %v1599_v15 = vpop.f32.mrf.mxu1 }
 0x920   :  { %v1300_v16 = vsel %vm37_vm0, %v1296_v14, 0.0 }
 0x921   :  { %1301 = vadd.xlane.f32.xlu1 %v1300_v16 }
 0x9aa   :  { %v1302_v18 = vpop.xlane.xlu1 %1301 }
 0x9ab   :  { %v1305_v17 = vmul.f32 0.03125, %v1302_v18 }
 0x9ad   :  { %v1307_v19 = vsub.f32 %v1296_v14, %v1305_v17 }
 0x9af   :  { %v1309_v20 = vmul.f32 %v1307_v19, %v1307_v19 }
 0x9b1   :  { %v1313_v21 = vsel %vm37_vm0, %v1309_v20, 0.0 }
 0x9b2   :  { %1314 = vadd.xlane.f32.xlu0 %v1313_v21 }
 0x9b3   :  { %1638 = shalt.err (!%p1635_p4)
}
 0x9b4   :  { %s1675_s21 = smov 128   ;;  %s1676_s22 = smov 8  }
 0x9b5   :  { %1349 = dma.vmem_to_hbm [thread:$0]  %s1344_s2, 512, %s2037_s7, [#allocation5], %s1675_s21, %s1675_s21, %s1676_s22  }
 0x9b6   :  { %s1677_s25 = smov [#allocation2]  }
 0x9b7   :  { %s1331_s26 = sshll.u32 %s1677_s25, 4  ;;  %s1332_s26 = int_to_ptr.vmem [resolvable:$true] %s1331_s26 }
 0x9b8   :  { %s1647_s1 = scalar_lea.vmem %s1332_s26, 256  ;;  %p1652_p6 = scmp.lt.s32.totalorder %s1332_s26, %s1332_s26 }
 0x9b9   :  { %p1648_p5 = scmp.ne.s32.totalorder %s1332_s26, %s1647_s1  ;;  %p1653_p7 = scmp.lt.s32.totalorder %s1647_s1, %s1647_s1 }
 0x9bb   :  { %p1654_p8 = por %p1653_p7, %p1652_p6 }
 0x9bd   :  { %p1655_p9 = pnand %p1654_p8, %p1648_p5 }
 0xa3b   :  { %v1315_v12 = vpop.xlane.xlu0 %1314 }
 0xa3c   :  { %v1317_v22 = vmul.f32 0.03125, %v1315_v12 }
 0xa3e   :  { %v1319_v24 = vadd.f32 1e-05, %v1317_v22 }
 0xa40   :  { %1625 = vrsqrt.f32 %v1319_v24 }
 0xa4d   :  { %v1626_v25 = vpop.eup %1625 }
 0xa4e   :  { %v1323_v26 = vmul.f32 %v1626_v25, %v1307_v19 }
 0xa50   :  { %1325 = vst.msk [vmem:[#allocation2 + $0x8] sm:$0xff] %vm37_vm0, %v1323_v26 }
 0xa51   :  { %1658 = shalt.err (!%p1655_p9)
}
 0xa52   :  { %1337 = dma.vmem_to_hbm [thread:$0]  %s1332_s26, 256, %s2036_s6, [#allocation3], %s1675_s21, %s1675_s21, %s1676_s22  }
 0xa53   :  { %1667 = dma.done.wait [#allocation3], 256  }
 0xa54   :  { %1668 = vsyncadd [#allocation3], 4294967040 }
 0xa55   :  { %1669 = dma.done.wait [#allocation5], 512  }
 0xa56   :  { %1670 = vsyncadd [#allocation5], 4294966784 }
 0xa57   :  { %1356 = vsyncpa [#allocation3], 1 }
 0xa58   :  { %1357 = vsyncpa [#allocation5], 1 }

</bundles_post_ra>
